<compile_context>
chip_gen: v6e
topology: v6e:2x2x1
jax: 0.10.0
libtpu: 0.0.40
codegen_flags: <defaults>
</compile_context>

<pallas_src>
import jax
import jax.numpy as jnp
from jax import lax
from jax.experimental import pallas as pl
from jax.experimental.pallas import tpu as pltpu


def _round_up(v, m):
    return (v + m - 1) // m * m


def _vmem_limit_bytes():
    """Scoped-VMEM cap derived from the actual part (64 MiB v7x, 128 MiB v5e/v6e)."""
    try:
        cap = pltpu.get_tpu_info().vmem_capacity_bytes
    except Exception:
        cap = 64 * 1024 * 1024  # conservative (v7x) fallback
    return int(cap * 3 // 4)


# ---------------------------------------------------------------------------
# Kernels
# ---------------------------------------------------------------------------
def _conv_kernel(t_ref, w_ref, b_ref, o_ref):
    """One (TN x 9C) @ (9C x TM) MXU matmul + f32 bias epilogue.

      t_ref : (9C, TM)  im2col block, spatial on lanes (streamed per M tile)
      w_ref : (TN, 9C)  weight block (resident while the OC block is fixed)
      b_ref : (TN, 1)   f32 bias column
      o_ref : (TN, TM)
    """
    acc = jnp.dot(w_ref[...], t_ref[...], preferred_element_type=jnp.float32)
    o_ref[...] = (acc + b_ref[...]).astype(o_ref.dtype)


def _avgpool_kernel(x_ref, s_ref, o_ref):
    """2x2 / stride-2 average pool as a selection-matrix matmul.

      x_ref : (TM, 2W)  two input rows per output row, NCHW-flat (streamed)
      s_ref : (2W, OW)  constant 0.25-selection matrix (fetched once)
      o_ref : (TM, OW)
    """
    o_ref[...] = jnp.dot(x_ref[...], s_ref[...],
                         preferred_element_type=jnp.float32).astype(o_ref.dtype)


# ---------------------------------------------------------------------------
# Module
# ---------------------------------------------------------------------------
class Downsample:
    """JAX/Pallas port of rawdiffusion Downsample (dims=2 only)."""

    def __init__(self, channels, use_conv, dims=2, out_channels=None, key=None):
        assert dims == 2, "only dims=2 implemented"  # TODO(synk): dims=1/3 not ported
        self.channels = channels
        self.out_channels = out_channels or channels
        self.use_conv = use_conv
        self.dims = dims
        if use_conv:
            key = key if key is not None else jax.random.PRNGKey(0)
            kw, kb = jax.random.split(key)
            fan_in = channels * 3 * 3
            bound = 1.0 / (fan_in ** 0.5)
            # torch Conv2d weight layout: (OC, C, KH, KW); deterministic synthetic init
            self.weight = jax.random.uniform(
                kw, (self.out_channels, channels, 3, 3), jnp.float32, -bound, bound)
            self.bias = jax.random.uniform(
                kb, (self.out_channels,), jnp.float32, -bound, bound)
        else:
            assert self.channels == self.out_channels

    def __call__(self, x):
        assert x.shape[1] == self.channels
        if self.use_conv:
            return self._conv_forward(x)
        return self._avgpool_forward(x)

    # Conv2d(3x3, stride=2, padding=1, padding_mode='reflect')
    def _conv_forward(self, x):
        n, c, h, w = x.shape
        oh = (h + 2 - 3) // 2 + 1
        ow = (w + 2 - 3) // 2 + 1
        oc = self.out_channels
        m_sp = oh * ow                     # spatial per image (lane axis)
        k = 9 * c                          # contraction dim = (kh, kw, c)
        dtype = x.dtype
        itemsize = jnp.dtype(dtype).itemsize

        # --- XLA glue: reflect pad (NCHW) + im2col, spatial on lanes ----------
        xp = jnp.pad(x, ((0, 0), (0, 0), (1, 1), (1, 1)), mode="reflect")
        taps = [xp[:, :, kh:kh + 2 * oh:2, kw_:kw_ + 2 * ow:2]
                for kh in range(3) for kw_ in range(3)]
        t = jnp.stack(taps, axis=1).reshape(n, k, m_sp)      # (N, 9C, OH*OW)

        # Weight (OC, 9C) in the activation dtype (bf16 stays bf16 on the MXU);
        # bias kept in f32 for the epilogue.
        w_mat = jnp.transpose(self.weight, (0, 2, 3, 1)).reshape(oc, k).astype(dtype)
        b_col = self.bias.astype(jnp.float32).reshape(oc, 1)

        # --- tile sizes --------------------------------------------------------
        # OC sits on sublanes (needs %8 or full extent); OH*OW sits on lanes
        # (needs %128 or full extent).
        tn = min(oc, 256) if oc % 8 == 0 else oc
        vmem_limit = _vmem_limit_bytes()
        budget = int(vmem_limit * 0.6)
        resident = 2 * (tn * k * itemsize + tn * 4)               # weight + bias (x2 buf)
        per_col = 2 * k * itemsize + 2 * tn * itemsize + tn * 4   # T + out (x2) + f32 acc
        tm_fit = max(128, (budget - resident) // max(per_col, 1))
        tm_fit = max(128, min((tm_fit // 128) * 128, 2048))
        tm = m_sp if m_sp <= tm_fit else tm_fit

        noc = pl.cdiv(oc, tn)
        nm = pl.cdiv(m_sp, tm)

        cost = pl.CostEstimate(
            flops=2 * n * oc * k * m_sp,
            transcendentals=0,
            bytes_accessed=(n * k * m_sp + oc * k + n * oc * m_sp) * itemsize)

        out = pl.pallas_call(
            _conv_kernel,
            out_shape=jax.ShapeDtypeStruct((n, oc, m_sp), dtype),
            grid=(n, noc, nm),
            in_specs=[
                pl.BlockSpec((None, k, tm), lambda b, j, i: (b, 0, i)),   # im2col
                pl.BlockSpec((tn, k), lambda b, j, i: (j, 0)),            # weights
                pl.BlockSpec((tn, 1), lambda b, j, i: (j, 0)),            # bias
            ],
            out_specs=pl.BlockSpec((None, tn, tm), lambda b, j, i: (b, j, i)),
            compiler_params=pltpu.CompilerParams(
                dimension_semantics=("parallel", "parallel", "parallel"),
                vmem_limit_bytes=vmem_limit),
            cost_estimate=cost,
        )(t, w_mat, b_col)

        return out.reshape(n, oc, oh, ow)        # free reshape, no transpose

    # AvgPool2d(kernel_size=2, stride=2)
    def _avgpool_forward(self, x):
        n, c, h, w = x.shape
        oh, ow = h // 2, w // 2
        m = n * c * oh
        dtype = x.dtype
        itemsize = jnp.dtype(dtype).itemsize

        if h != 2 * oh:                          # PyTorch floor behaviour (odd H)
            x = x[:, :, :2 * oh, :]
        xr = x.reshape(m, 2 * w)                 # free NCHW reshape: (kh, w) on lanes

        # Selection matrix: S[kh*W + 2*j + kw, j] = 0.25; an odd trailing column
        # of W (if any) maps to no output column -> PyTorch floor behaviour.
        widx = jnp.arange(2 * w) % w
        s_mat = jnp.where((widx[:, None] // 2) == jnp.arange(ow)[None, :],
                          0.25, 0.0).astype(dtype)

        vmem_limit = _vmem_limit_bytes()
        budget = int(vmem_limit * 0.6)
        resident = 2 * (2 * w * ow * itemsize)                      # S (x2 buf)
        per_row = 2 * (2 * w * itemsize + ow * itemsize) + ow * 4   # in/out (x2) + f32 acc
        tm = max(8, (budget - resident) // max(per_row, 1))
        tm = max(8, min((tm // 8) * 8, 4096))
        if m <= tm:
            tm = m                                # full extent (always legal)

        out = pl.pallas_call(
            _avgpool_kernel,
            out_shape=jax.ShapeDtypeStruct((m, ow), dtype),
            grid=(pl.cdiv(m, tm),),
            in_specs=[
                pl.BlockSpec((tm, 2 * w), lambda i: (i, 0)),
                pl.BlockSpec((2 * w, ow), lambda i: (0, 0)),   # fetched once
            ],
            out_specs=pl.BlockSpec((tm, ow), lambda i: (i, 0)),
            compiler_params=pltpu.CompilerParams(
                dimension_semantics=("parallel",),
                vmem_limit_bytes=vmem_limit),
        )(xr, s_mat)

        return out.reshape(n, c, oh, ow)          # free reshape, no transpose


# ---------------------------------------------------------------------------
# Pure-JAX references
# ---------------------------------------------------------------------------
def _conv_reference(x, weight, bias):
    xp = jnp.pad(x, ((0, 0), (0, 0), (1, 1), (1, 1)), mode="reflect")
    y = lax.conv_general_dilated(
        xp, weight, window_strides=(2, 2), padding="VALID",
        dimension_numbers=("NCHW", "OIHW", "NCHW"))
    return y + bias.reshape(1, -1, 1, 1)


def _avgpool_reference(x):
    n, c, h, w = x.shape
    return x.reshape(n, c, h // 2, 2, w // 2, 2).mean(axis=(3, 5))


if __name__ == "__main__":
    key = jax.random.PRNGKey(0)
    kx, kp = jax.random.split(key)
    x = jax.random.normal(kx, (2, 4, 16, 16), jnp.float32)  # NCHW

    # use_conv=True path
    ds_conv = Downsample(channels=4, use_conv=True, dims=2, key=kp)
    y_conv = jax.block_until_ready(ds_conv(x))
    y_conv_ref = _conv_reference(x, ds_conv.weight, ds_conv.bias)
    assert y_conv.shape == (2, 4, 8, 8)
    assert jnp.allclose(y_conv, y_conv_ref, atol=1e-5, rtol=1e-4), (
        float(jnp.max(jnp.abs(y_conv - y_conv_ref))))

    # use_conv=False path (average pool)
    ds_pool = Downsample(channels=4, use_conv=False, dims=2)
    y_pool = jax.block_until_ready(ds_pool(x))
    y_pool_ref = _avgpool_reference(x)
    assert y_pool.shape == (2, 4, 8, 8)
    assert jnp.allclose(y_pool, y_pool_ref, atol=1e-5, rtol=1e-4)

    print("KERNEL_OK")
</pallas_src>

<mosaic_0001>
module attributes {stable_mosaic.version = 11 : i64} {
  func.func @_conv_kernel(%arg0: i32, %arg1: i32, %arg2: i32, %arg3: memref<1x36x64xf32, #tpu.memory_space<vmem>>, %arg4: memref<4x36xf32, #tpu.memory_space<vmem>>, %arg5: memref<4x1xf32, #tpu.memory_space<vmem>>, %arg6: memref<1x4x64xf32, #tpu.memory_space<vmem>>) attributes {dimension_semantics = [#tpu.dimension_semantics<parallel>, #tpu.dimension_semantics<parallel>, #tpu.dimension_semantics<parallel>], iteration_bounds = array<i64: 2, 1, 1>, scalar_prefetch = 0 : i64, scratch_operands = 0 : i64, tpu.core_type = #tpu.core_type<tc>, window_params = [{transform_indices = @transform_0, window_bounds = array<i64: 1, 36, 64>}, {transform_indices = @transform_1, window_bounds = array<i64: 4, 36>}, {transform_indices = @transform_2, window_bounds = array<i64: 4, 1>}, {transform_indices = @transform_3, window_bounds = array<i64: 1, 4, 64>}]} {
    %c0 = arith.constant 0 : index
    %c0_0 = arith.constant 0 : index
    %0 = vector.load %arg4[%c0, %c0_0] : memref<4x36xf32, #tpu.memory_space<vmem>>, vector<4x36xf32>
    %c0_1 = arith.constant 0 : index
    %c0_2 = arith.constant 0 : index
    %c0_3 = arith.constant 0 : index
    %1 = vector.load %arg3[%c0_1, %c0_2, %c0_3] : memref<1x36x64xf32, #tpu.memory_space<vmem>>, vector<1x36x64xf32>
    %2 = vector.shape_cast %1 : vector<1x36x64xf32> to vector<36x64xf32>
    %cst = arith.constant dense<0.000000e+00> : vector<4x64xf32>
    %3 = tpu.matmul %0, %2, %cst {dimension_numbers = #tpu.dot_dimension_numbers<[1], [0], [0], [1], [0, 0, 1, 1], [], []>} : vector<4x36xf32>, vector<36x64xf32>, vector<4x64xf32> -> vector<4x64xf32>
    %c0_4 = arith.constant 0 : index
    %c0_5 = arith.constant 0 : index
    %4 = vector.load %arg5[%c0_4, %c0_5] : memref<4x1xf32, #tpu.memory_space<vmem>>, vector<4x1xf32>
    %5 = vector.broadcast %4 : vector<4x1xf32> to vector<4x64xf32>
    %6 = arith.addf %3, %5 : vector<4x64xf32>
    %c0_6 = arith.constant 0 : index
    %c0_7 = arith.constant 0 : index
    %c0_8 = arith.constant 0 : index
    %7 = vector.load %arg6[%c0_6, %c0_7, %c0_8] : memref<1x4x64xf32, #tpu.memory_space<vmem>>, vector<1x4x64xf32>
    %8 = vector.shape_cast %7 : vector<1x4x64xf32> to vector<4x64xf32>
    %9 = vector.shape_cast %6 : vector<4x64xf32> to vector<1x4x64xf32>
    tpu.vector_store %arg6[%c0_6, %c0_7, %c0_8], %9 {strides = array<i32>} : memref<1x4x64xf32, #tpu.memory_space<vmem>>, vector<1x4x64xf32>,
    return
  }
  func.func @transform_0(%arg0: i32, %arg1: i32, %arg2: i32) -> (i32, i32, i32) {
    %c0_i32 = arith.constant 0 : i32
    %c0_i32_0 = arith.constant 0 : i32
    return %arg0, %c0_i32, %arg2 : i32, i32, i32
  }
  func.func @transform_1(%arg0: i32, %arg1: i32, %arg2: i32) -> (i32, i32) {
    %c0_i32 = arith.constant 0 : i32
    %c0_i32_0 = arith.constant 0 : i32
    return %arg1, %c0_i32 : i32, i32
  }
  func.func @transform_2(%arg0: i32, %arg1: i32, %arg2: i32) -> (i32, i32) {
    %c0_i32 = arith.constant 0 : i32
    %c0_i32_0 = arith.constant 0 : i32
    return %arg1, %c0_i32 : i32, i32
  }
  func.func @transform_3(%arg0: i32, %arg1: i32, %arg2: i32) -> (i32, i32, i32) {
    %c0_i32 = arith.constant 0 : i32
    return %arg0, %arg1, %arg2 : i32, i32, i32
  }
}

</mosaic_0001>

<bundles_post_ra>
// kernel: tpu_custom_call.1
= control target key start
LH: loop header
LB: loop body
LE: loop exit
PB: predicated region body
PF: predicated region fallthrough
CT: control target
= control target key end

     0   :  { %8 = vsyncpa [#allocation3], 0  ;;  %s760_s0 = inlined_call_operand.vmem [shape: f32[2,36,64], index: 0, kind: input, shape index: {}]   ;;  %s761_s1 = inlined_call_operand.vmem [shape: f32[4,36], index: 1, kind: input, shape index: {}]   ;;  %s762_s2 = inlined_call_operand.vmem [shape: f32[4,1], index: 2, kind: input, shape index: {}]   ;;  %s763_s3 = inlined_call_operand.hbm [shape: f32[2,4,64], index: 3, kind: output, shape index: {}]  }
   0x1   :  { %10 = vsyncpa [#allocation3 + $0x1], 0  ;;  %s649_s12 = smov 0   ;;  %s651_s13 = smov 0  }
   0x2   :  { %s653_s14 = smov 0   ;;  %s655_s15 = smov 0  }
   0x3   :  { %s657_s16 = smov 0   ;;  %s659_s17 = smov 0  }
   0x4 LB: > { %s453_s18 = sadd.s32 4294967295, %s623_s17   ;;  %s454_s19 = sadd.s32 4294967294, %s623_s17   ;;  %s623_s17 = sphi %s659_s17, %s16_s17   ;;  %s619_s16 = sphi %s657_s16, %s770_s16   ;;  %s615_s15 = sphi %s655_s15, %s769_s15   ;;  %s611_s14 = sphi %s653_s14, %s768_s14   ;;  %s607_s13 = sphi %s651_s13, %s767_s13   ;;  %s603_s12 = sphi %s649_s12, %s766_s12  }
   0x5   : > { %s35_s20 = sadd.s32 1, %s619_s16  ;;  %s126_s21 = sadd.s32 1, %s611_s14 }
   0x6   : > { %p37_p0 = scmp.ge.s32.totalorder %s35_s20, 2  ;;  %p136_p1 = scmp.ne.s32.totalorder %s611_s14, %s607_s13 }
   0x7   : > { %p137_p2 = scmp.eq.s32.totalorder %s453_s18, 1  ;;  %p142_p3 = scmp.ne.s32.totalorder %s607_s13, %s603_s12 }
   0x8   : > { %s772_s20 = smov (%p37_p0, %s35_s20), 0  ;;  %p143_p5 = scmp.eq.s32.totalorder %s454_s19, 1 }
   0x9   : > { %p689_p4 = por %p137_p2, %p136_p1  ;;  %s119_s23 = ssub.s32 %s619_s16, %s772_s20 }
   0xa   : > { %p459_p6 = scmp.ge.s32.totalorder %s623_s17, 1  ;;  %p124_p7 = scmp.eq.s32.totalorder %s119_s23, 0 }
   0xb   : > { %p696_p8 = por %p143_p5, %p142_p3  ;;  %p186_p9 = scmp.lt.s32.totalorder %s623_s17, 3 }
   0xc   : > { %s702_s25 = scalar_select %p124_p7, %s611_s14, %s126_s21  }
   0xd   : > { %p187_p10 = pnand %p459_p6, %p186_p9 }
   0xe   : > { %p221_p11 = scmp.lt.s32.totalorder (!%p187_p10), %s615_s15, 1  ;;  %s218_s8 = sand.u32 (!%p187_p10), 1, %s607_s13  }
   0xf   : > { %190 = sbr.rel (%p187_p10) target bundleno = 243 (0xf3), region = 32  ;;  %s460_s9 = sshll.u32 (!%p187_p10), %s218_s8, 2 }
  0x10   : > { %s465_s10 = sshll.u32 (!%p187_p10), %s615_s15, 6  ;;  %s220_s11 = scalar_lea.vmem (!%p187_p10), [#allocation2], %s460_s9 }
  0x11   : > { %s345_s18 = sshll.u32 (!%p187_p10), %s220_s11, 4  ;;  %s720_s23 = scalar_lea.hbm (!%p187_p10), %s763_s3, %s465_s10  ;;  %s346_s18 = int_to_ptr.vmem [resolvable:$true] %s345_s18 }
  0x12   : > { %s330_s26 = scalar_lea.sflag (!%p187_p10), [#allocation3], %s218_s8  ;;  %s547_s27 = scalar_lea.vmem (!%p187_p10), %s346_s18, 64 }
  0x13   : > { %p548_p12 = scmp.ne.s32.totalorder (!%p187_p10), %s346_s18, %s547_s27 }
  0x14   : > { %v625_v0 = vmov 0.0   ;;  %vm626_vm0 = vmmov 0   ;;  %v243_v1 = vld [vmem:[%s762_s2] sm:$0xf]  ;;  %s222_s28 = scalar_select %p221_p11, %s615_s15, 1  ;;  %v627_v2 = vmov 0  }
  0x15   : > { %474 = vmatprep.subr.mxu0 %v625_v0  ;;  %484 = vmatprep.mubr.msk.f32.mxu0 %vm626_vm0, %v625_v0  ;;  %vm253_vm1 = vcmask 1043456   ;;  %v237_v8 = vld [vmem:[%s761_s1] sm:$0xf]  ;;  %vm249_vm2 = vcmask 293888   ;;  %vm327_vm3 = vcmask 519168   ;;  %p549_p13 = pnand %p548_p12, %p689_p4  ;;  %s628_s15 = smov [#allocation2]  }
  0x16   : > { %546 = vset.pattern.permute.xlu0 %v627_v2  ;;  %s487_s29 = smul.u32 40, %s222_s28  ;;  %s551_s28 = sshll.u32 %s628_s15, 4  ;;  %s552_s28 = int_to_ptr.vmem [resolvable:$false] %s551_s28 }
  0x17   : > { %246 = vperm.xlu0 %546, %v243_v1   ;;  %p550_p0 = pneg %p549_p13  ;;  %p554_p1 = scmp.lt.s32.totalorder %s346_s18, %s552_s28 }
  0x18   : > { %s228_s5 = scalar_lea.vmem %s760_s0, %s487_s29  ;;  %s553_s29 = scalar_lea.vmem %s552_s28, 128 }
  0x19   : > { %v242_v3 = vld [vmem:[%s228_s5 + $0x20] sm:$0xf]  ;;  %v241_v4 = vld [vmem:[%s228_s5 + $0x18] sm:$0xff]  ;;  %v240_v5 = vld [vmem:[%s228_s5 + $0x10] sm:$0xff]  ;;  %p555_p2 = scmp.lt.s32.totalorder %s553_s29, %s547_s27 }
  0x1a   : > { %475 = vmatpush3.msk.msra.mxu0 %vm253_vm1, %v242_v3  ;;  %v239_v6 = vld [vmem:[%s228_s5 + $0x8] sm:$0xff]  ;;  %v238_v7 = vld [vmem:[%s228_s5] sm:$0xff] }
  0x1b   : > { %476 = vmatprep.subr.mxu0 %v625_v0  ;;  %p556_p3 = por %p555_p2, %p554_p1 }
  0x1c   : > { %477 = vmatpush3.msra.mxu0 %v241_v4 }
  0x1d   : > { %478 = vmatprep.subr.mxu0 %v625_v0  ;;  %p557_p5 = pnand %p556_p3, %p550_p0 }
  0x1e   : > { %479 = vmatpush3.msra.mxu0 %v240_v5 }
  0x1f   : > { %480 = vmatprep.subr.mxu0 %v625_v0 }
  0x20   : > { %481 = vmatpush3.msra.mxu0 %v239_v6 }
  0x21   : > { %482 = vmatprep.subr.mxu0 %v625_v0 }
  0x22   : > { %483 = vmatpush3.msra.mxu0 %v238_v7 }
  0x23   : > { %485 = vmatmul.mubr.msk.f32.vlgmr.msra.gmra.mxu0 %vm249_vm2, %v237_v8 }
  0x92   : > { %v247_v9 = vpop.permute.xlu0 %246 }
  0xe3   : > { %v323_v10 = vpop.f32.mrf.mxu0 }
  0xe4   : > { %v324_v11 = vadd.f32 %v323_v10, %v247_v9 }
  0xe5   : > { %v486_v12 = vpop.f32.mrf.mxu0 }
  0xe6   : > { %328 = vst.msk [vmem:[%s220_s11] sm:$0xf] %vm327_vm3, %v324_v11 }
  0xe7   : > { %560 = shalt.err (!%p557_p5)
}
  0xe8   : > { %s561_s30 = scalar_lea.hbm %s720_s23, 64  ;;  %s565_s6 = scalar_lea.hbm %s763_s3, 128 }
  0xe9   : > { %p562_p6 = scmp.ne.s32.totalorder %s720_s23, %s561_s30  ;;  %p566_p10 = scmp.lt.s32.totalorder %s720_s23, %s763_s3 }
  0xea   : > { %p567_p11 = scmp.lt.s32.totalorder %s565_s6, %s561_s30 }
  0xeb   : > { %p563_p7 = pnand %p562_p6, %p689_p4 }
  0xec   : > { %p568_p12 = por %p567_p11, %p566_p10 }
  0xed   : > { %p564_p9 = pneg %p563_p7 }
  0xef   : > { %p569_p13 = pnand %p568_p12, %p564_p9 }
  0xf1   : > { %572 = shalt.err (!%p569_p13)
}
  0xf2   : > { %488 = dma.vmem_to_hbm [thread:$0]  (%p689_p4), %s346_s18, 64, %s720_s23, %s330_s26  }
  0xf3 PF: > { %p494_p0 = scmp.ge.s32.totalorder %s623_s17, 2  ;;  %s357_s9 = sand.u32 1, %s603_s12  }
  0xf4   : > { %s358_s10 = scalar_lea.sflag [#allocation3], %s357_s9 }
  0xf5   : > { %p491_p1 = pnand %p494_p0, %p696_p8 }
  0xf7   : > { %p492_p2 = pneg %p491_p1 }
  0xf9   : > { %598 = dma.done.wait (%p492_p2), %s358_s10, 64  }
  0xfa   : > { %600 = vsyncadd (%p492_p2), %s358_s10, 4294967232  ;;  %s16_s17 = sadd.s32 1, %s623_s17   ;;  %s766_s12 = smov %s607_s13 }
  0xfb   : > { %p13_p3 = scmp.ge.s32.totalorder %s16_s17, 4   ;;  %s767_s13 = smov %s611_s14 }
  0xfc   : > { %s768_s14 = smov %s702_s25  ;;  %s769_s15 = smov %s619_s16 }
  0xfd   : > { %s770_s16 = smov %s772_s20  ;;  %15 = sbr.rel (!%p13_p3) target bundleno = 4 (0x4), region = 73 }
 0x102   :  { %363 = vsyncpa [#allocation3], 1 }
 0x103   :  { %365 = vsyncpa [#allocation3 + $0x1], 1 }

</bundles_post_ra>
